<compile_context>
chip_gen: v6e
topology: v6e:2x2x1
jax: 0.10.0
libtpu: 0.0.40
codegen_flags: <defaults>
</compile_context>

<pallas_src>
import functools

import jax
import jax.numpy as jnp
from jax.experimental import pallas as pl


# ----------------------------------------------------------------------------
# Fused kernel: one-hot compare -> conv-as-banded-matmul + ReLU -> fc1 + ReLU -> fc2.
# Only int32 token rows + (pre-laid-out) weights come in; (B, num_inputs) goes out.
# ----------------------------------------------------------------------------
def _fused_oracle_kernel(tok_ref, vid_ref, wc_ref, bc_ref, w1_ref, b1_ref,
                         w2_ref, b2_ref, out_ref):
    # One-hot of every (b, m, l) token, built in VMEM. Columns are (m, l, v)-ordered so the
    # lane axis is dense; exact in bf16.
    oh = (tok_ref[...] == vid_ref[...]).astype(jnp.bfloat16)          # (B, M*L*V)

    # Conv1d(valid) + bias + ReLU as ONE matmul against the banded conv matrix.
    # Output columns are t-major (t*C + c), exactly the layout fc1 expects.
    z = jnp.dot(oh, wc_ref[...], preferred_element_type=jnp.float32)  # (B, T*C) f32
    z = jnp.maximum(z + bc_ref[...], 0.0)

    # fc1 + ReLU as ONE matmul over the full (t, c) contraction.
    h = jnp.dot(z.astype(jnp.bfloat16), w1_ref[...],
                preferred_element_type=jnp.float32)                   # (B, H) f32
    h = jnp.maximum(h + b1_ref[...], 0.0)

    # fc2; single store of the whole (B, M) result.
    out_ref[...] = jnp.dot(h.astype(jnp.bfloat16), w2_ref[...],
                           preferred_element_type=jnp.float32) + b2_ref[...]


def _full_spec(arr):
    """Whole-array block resident in VMEM (no grid)."""
    zeros = (0,) * arr.ndim
    return pl.BlockSpec(arr.shape, lambda: zeros)


# ----------------------------------------------------------------------------
# Parameters (synthetic, deterministic) + one-time kernel-friendly re-layouts at init.
# ----------------------------------------------------------------------------
class ProtMIMOOracleParams:
    def __init__(self, key, *, vocab, num_inputs, seq_len, channels, kernel_size, hidden_dim):
        self.vocab = vocab
        self.num_inputs = num_inputs
        self.seq_len = seq_len
        self.channels = channels
        self.kernel_size = kernel_size
        self.hidden_dim = hidden_dim
        self.l_out = seq_len - kernel_size + 1  # valid conv
        M, L, V, C, K, T, H = num_inputs, seq_len, vocab, channels, kernel_size, self.l_out, hidden_dim

        cin = M * V
        k_cw, k_cb, k_f1w, k_f1b, k_f2w, k_f2b = jax.random.split(key, 6)
        # PyTorch-layout parameters (Conv1d weight (C_out, C_in, K); Linear stored as (in, out)).
        self.conv_w = 0.1 * jax.random.normal(k_cw, (C, cin, K), jnp.float32)
        self.conv_b = 0.1 * jax.random.normal(k_cb, (C,), jnp.float32)
        flat = C * T
        self.fc1_w = 0.1 * jax.random.normal(k_f1w, (flat, H), jnp.float32)
        self.fc1_b = 0.1 * jax.random.normal(k_f1b, (H,), jnp.float32)
        self.fc2_w = 0.1 * jax.random.normal(k_f2w, (H, M), jnp.float32)
        self.fc2_b = 0.1 * jax.random.normal(k_f2b, (M,), jnp.float32)

        # --- kernel-friendly re-layouts (one-time at init, free at runtime) ---
        # (1) Conv1d as a banded matrix: W_band[(m*L + l)*V + v, t*C + c] = conv_w[c, m*V+v, l-t]
        #     for 0 <= l - t < K, else 0.  This lets the conv be ONE matmul whose output is
        #     already t-major flattened for fc1 (no in-kernel reshape needed).
        w4 = self.conv_w.reshape(C, M, V, K)                               # (C, M, V, K)
        k_off = jnp.arange(L)[:, None] - jnp.arange(T)[None, :]           # (L, T) = l - t
        valid = ((k_off >= 0) & (k_off < K)).astype(jnp.float32)          # (L, T)
        k_idx = jnp.clip(k_off, 0, K - 1)                                 # (L, T)
        band = w4[:, :, :, k_idx] * valid[None, None, None, :, :]         # (C, M, V, L, T)
        band = jnp.transpose(band, (1, 3, 2, 4, 0))                       # (M, L, V, T, C)
        self.conv_w_band = band.reshape(M * L * V, T * C).astype(jnp.bfloat16)
        self.conv_b_row = jnp.tile(self.conv_b, (T,)).reshape(1, T * C)   # f32, t-major

        # (2) fc1 weight re-ordered from PyTorch's channel-major flatten (c*T + t) to the
        #     t-major (t*C + c) order produced by the banded conv matmul.
        self.fc1_w_kernel = (self.fc1_w.reshape(C, T, H)
                             .transpose(1, 0, 2).reshape(T * C, H).astype(jnp.bfloat16))
        self.fc1_b_row = self.fc1_b.reshape(1, H)                         # f32
        self.fc2_w_kernel = self.fc2_w.astype(jnp.bfloat16)
        self.fc2_b_row = self.fc2_b.reshape(1, M)                         # f32

        # (3) Static lane pattern of vocab ids for the in-kernel one-hot compare.
        self.v_ids_row = jnp.tile(jnp.arange(V, dtype=jnp.int32), M * L).reshape(1, M * L * V)


def prot_mimo_oracle_forward(params: ProtMIMOOracleParams, tokens):
    """tokens: int32 (B, num_inputs, seq_len) -> predictions float32 (B, num_inputs)."""
    b, m, l = tokens.shape
    assert m == params.num_inputs and l == params.seq_len
    v = params.vocab
    # Tiny int32 layout prep: lane-dense (B, M*L*V) row, each token repeated V times along
    # lanes so a single in-kernel compare against v_ids yields the full one-hot.
    # Tokens outside [0, V) silently give an all-zero one-hot row (same as the reference;
    # PyTorch F.one_hot would raise).
    tok_rep = jnp.repeat(tokens.astype(jnp.int32).reshape(b, m * l), v, axis=1)

    args = (tok_rep, params.v_ids_row, params.conv_w_band, params.conv_b_row,
            params.fc1_w_kernel, params.fc1_b_row, params.fc2_w_kernel, params.fc2_b_row)
    # TODO(synk): at large batch, add a grid over B with dimension_semantics=("parallel",)
    # (v7x has 2 TensorCores) and a vmem_limit_bytes guard; at B=2 a single invocation wins.
    return pl.pallas_call(
        _fused_oracle_kernel,
        out_shape=jax.ShapeDtypeStruct((b, m), jnp.float32),
        in_specs=[_full_spec(a) for a in args],
        out_specs=pl.BlockSpec((b, m), lambda: (0, 0)),
    )(*args)


# ----------------------------------------------------------------------------
# Pure-JAX f32 reference (same reconstructed semantics) for in-script validation.
# ----------------------------------------------------------------------------
def _reference_forward(params: ProtMIMOOracleParams, tokens):
    b, m, l = tokens.shape
    v, k, c, t = params.vocab, params.kernel_size, params.channels, params.l_out
    x_oh = jax.nn.one_hot(tokens, v, dtype=jnp.float32)               # (B, M, L, V)
    x_ncw = jnp.transpose(x_oh, (0, 1, 3, 2)).reshape(b, m * v, l)    # (B, M*V, L)
    win = jnp.arange(t)[:, None] + jnp.arange(k)[None, :]             # (T, K)
    patches = x_ncw[:, :, win]                                        # (B, Cin, T, K)
    patches = jnp.transpose(patches, (0, 2, 1, 3)).reshape(b * t, m * v * k)
    w_conv = params.conv_w.reshape(c, m * v * k).T                    # (Cin*K, C)
    conv = jnp.maximum(patches @ w_conv + params.conv_b[None, :], 0.0)
    conv = jnp.transpose(conv.reshape(b, t, c), (0, 2, 1)).reshape(b, c * t)  # channel-major flatten
    h = jnp.maximum(conv @ params.fc1_w + params.fc1_b[None, :], 0.0)
    return h @ params.fc2_w + params.fc2_b[None, :]


if __name__ == "__main__":
    # Small shapes consistent with the MIMO oracle.
    B, M, L, V = 2, 3, 16, 8      # batch, num MIMO inputs, seq len, alphabet size
    C, K, H = 32, 5, 32           # conv channels, kernel size, hidden dim

    key = jax.random.PRNGKey(0)
    k_params, k_tokens = jax.random.split(key)
    params = ProtMIMOOracleParams(
        k_params, vocab=V, num_inputs=M, seq_len=L,
        channels=C, kernel_size=K, hidden_dim=H,
    )
    tokens = jax.random.randint(k_tokens, (B, M, L), 0, V, dtype=jnp.int32)

    fwd = jax.jit(functools.partial(prot_mimo_oracle_forward, params))
    preds = fwd(tokens)
    jax.block_until_ready(preds)
    assert preds.shape == (B, M) and preds.dtype == jnp.float32

    ref = _reference_forward(params, tokens)
    # bf16 MXU operands (f32 accumulation) vs the f32 reference: ~0.5-1% relative error budget.
    assert jnp.allclose(preds, ref, rtol=2e-2, atol=2e-2), (preds, ref)
    print("KERNEL_OK")
</pallas_src>

<mosaic_0001>
module attributes {stable_mosaic.version = 11 : i64} {
  func.func @_fused_oracle_kernel(%arg0: memref<2x384xi32, #tpu.memory_space<vmem>>, %arg1: memref<1x384xi32, #tpu.memory_space<vmem>>, %arg2: memref<384x384xbf16, #tpu.memory_space<vmem>>, %arg3: memref<1x384xf32, #tpu.memory_space<vmem>>, %arg4: memref<384x32xbf16, #tpu.memory_space<vmem>>, %arg5: memref<1x32xf32, #tpu.memory_space<vmem>>, %arg6: memref<32x3xbf16, #tpu.memory_space<vmem>>, %arg7: memref<1x3xf32, #tpu.memory_space<vmem>>, %arg8: memref<2x3xf32, #tpu.memory_space<vmem>>) attributes {dimension_semantics = [], scalar_prefetch = 0 : i64, scratch_operands = 0 : i64, tpu.core_type = #tpu.core_type<tc>} {
    %c0 = arith.constant 0 : index
    %c0_0 = arith.constant 0 : index
    %0 = vector.load %arg0[%c0, %c0_0] : memref<2x384xi32, #tpu.memory_space<vmem>>, vector<2x384xi32>
    %c0_1 = arith.constant 0 : index
    %c0_2 = arith.constant 0 : index
    %1 = vector.load %arg1[%c0_1, %c0_2] : memref<1x384xi32, #tpu.memory_space<vmem>>, vector<1x384xi32>
    %2 = vector.broadcast %1 : vector<1x384xi32> to vector<2x384xi32>
    %3 = arith.cmpi eq, %0, %2 : vector<2x384xi32>
    %4 = arith.extui %3 : vector<2x384xi1> to vector<2x384xi32>
    %5 = arith.sitofp %4 : vector<2x384xi32> to vector<2x384xf32>
    %6 = arith.truncf %5 : vector<2x384xf32> to vector<2x384xbf16>
    %c0_3 = arith.constant 0 : index
    %c0_4 = arith.constant 0 : index
    %7 = vector.load %arg2[%c0_3, %c0_4] : memref<384x384xbf16, #tpu.memory_space<vmem>>, vector<384x384xbf16>
    %cst = arith.constant dense<0.000000e+00> : vector<2x384xf32>
    %8 = tpu.matmul %6, %7, %cst {dimension_numbers = #tpu.dot_dimension_numbers<[1], [0], [0], [1], [0, 0, 1, 1], [], []>} : vector<2x384xbf16>, vector<384x384xbf16>, vector<2x384xf32> -> vector<2x384xf32>
    %c0_5 = arith.constant 0 : index
    %c0_6 = arith.constant 0 : index
    %9 = vector.load %arg3[%c0_5, %c0_6] : memref<1x384xf32, #tpu.memory_space<vmem>>, vector<1x384xf32>
    %10 = vector.broadcast %9 : vector<1x384xf32> to vector<2x384xf32>
    %11 = arith.addf %8, %10 : vector<2x384xf32>
    %cst_7 = arith.constant 0.000000e+00 : f32
    %12 = vector.broadcast %cst_7 : f32 to vector<2x384xf32>
    %13 = arith.maximumf %11, %12 : vector<2x384xf32>
    %14 = arith.truncf %13 : vector<2x384xf32> to vector<2x384xbf16>
    %c0_8 = arith.constant 0 : index
    %c0_9 = arith.constant 0 : index
    %15 = vector.load %arg4[%c0_8, %c0_9] : memref<384x32xbf16, #tpu.memory_space<vmem>>, vector<384x32xbf16>
    %cst_10 = arith.constant dense<0.000000e+00> : vector<2x32xf32>
    %16 = tpu.matmul %14, %15, %cst_10 {dimension_numbers = #tpu.dot_dimension_numbers<[1], [0], [0], [1], [0, 0, 1, 1], [], []>} : vector<2x384xbf16>, vector<384x32xbf16>, vector<2x32xf32> -> vector<2x32xf32>
    %c0_11 = arith.constant 0 : index
    %c0_12 = arith.constant 0 : index
    %17 = vector.load %arg5[%c0_11, %c0_12] : memref<1x32xf32, #tpu.memory_space<vmem>>, vector<1x32xf32>
    %18 = vector.broadcast %17 : vector<1x32xf32> to vector<2x32xf32>
    %19 = arith.addf %16, %18 : vector<2x32xf32>
    %cst_13 = arith.constant 0.000000e+00 : f32
    %20 = vector.broadcast %cst_13 : f32 to vector<2x32xf32>
    %21 = arith.maximumf %19, %20 : vector<2x32xf32>
    %22 = arith.truncf %21 : vector<2x32xf32> to vector<2x32xbf16>
    %c0_14 = arith.constant 0 : index
    %c0_15 = arith.constant 0 : index
    %23 = vector.load %arg6[%c0_14, %c0_15] : memref<32x3xbf16, #tpu.memory_space<vmem>>, vector<32x3xbf16>
    %cst_16 = arith.constant dense<0.000000e+00> : vector<2x3xf32>
    %24 = tpu.matmul %22, %23, %cst_16 {dimension_numbers = #tpu.dot_dimension_numbers<[1], [0], [0], [1], [0, 0, 1, 1], [], []>} : vector<2x32xbf16>, vector<32x3xbf16>, vector<2x3xf32> -> vector<2x3xf32>
    %c0_17 = arith.constant 0 : index
    %c0_18 = arith.constant 0 : index
    %25 = vector.load %arg7[%c0_17, %c0_18] : memref<1x3xf32, #tpu.memory_space<vmem>>, vector<1x3xf32>
    %26 = vector.broadcast %25 : vector<1x3xf32> to vector<2x3xf32>
    %27 = arith.addf %24, %26 : vector<2x3xf32>
    %c0_19 = arith.constant 0 : index
    %c0_20 = arith.constant 0 : index
    %28 = vector.load %arg8[%c0_19, %c0_20] : memref<2x3xf32, #tpu.memory_space<vmem>>, vector<2x3xf32>
    tpu.vector_store %arg8[%c0_19, %c0_20], %27 {strides = array<i32>} : memref<2x3xf32, #tpu.memory_space<vmem>>, vector<2x3xf32>,
    return
  }
}

</mosaic_0001>

<bundles_post_ra>
// kernel: prot_mimo_oracle_forward.1
= control target key start
LH: loop header
LB: loop body
LE: loop exit
PB: predicated region body
PF: predicated region fallthrough
CT: control target
= control target key end

     0   :  { %13 = vsyncpa [#allocation3], 0  ;;  %s1719_s0 = inlined_call_operand.vmem [shape: s32[2,384], index: 0, kind: input, shape index: {}]   ;;  %s1720_s1 = inlined_call_operand.vmem [shape: s32[1,384], index: 1, kind: input, shape index: {}]   ;;  %s1721_s2 = inlined_call_operand.hbm [shape: bf16[384,384], index: 2, kind: input, shape index: {}]   ;;  %s1722_s3 = inlined_call_operand.vmem [shape: f32[1,384], index: 3, kind: input, shape index: {}]   ;;  %s1723_s4 = inlined_call_operand.vmem [shape: bf16[384,32], index: 4, kind: input, shape index: {}]   ;;  %s1724_s5 = inlined_call_operand.vmem [shape: f32[1,32], index: 5, kind: input, shape index: {}]   ;;  %s1725_s6 = inlined_call_operand.vmem [shape: bf16[32,3], index: 6, kind: input, shape index: {}]   ;;  %s1726_s7 = inlined_call_operand.vmem [shape: f32[1,3], index: 7, kind: input, shape index: {}]   ;;  %s1727_s8 = inlined_call_operand.hbm [shape: f32[2,3], index: 8, kind: output, shape index: {}]  }
   0x1   :  { %14 = vsyncpa [#allocation4], 0  ;;  %s1520_s27 = smov [#allocation2]  }
   0x2   :  { %s24_s28 = sshll.u32 %s1520_s27, 4  ;;  %s25_s28 = int_to_ptr.vmem [resolvable:$true] %s24_s28 }
   0x3   :  { %s1484_s29 = scalar_lea.vmem %s25_s28, 9216  ;;  %p1489_p1 = scmp.lt.s32.totalorder %s25_s28, %s25_s28 }
   0x4   :  { %p1485_p0 = scmp.ne.s32.totalorder %s25_s28, %s1484_s29  ;;  %p1490_p2 = scmp.lt.s32.totalorder %s1484_s29, %s1484_s29 }
   0x6   :  { %p1491_p3 = por %p1490_p2, %p1489_p1 }
   0x8   :  { %p1492_p4 = pnand %p1491_p3, %p1485_p0 }
   0xa   :  { %1495 = shalt.err (!%p1492_p4)
}
   0xb   :  { %s1521_s30 = smov 192   ;;  %s1522_s9 = smov 12  }
   0xc   :  { %30 = dma.hbm_to_vmem [thread:$0]  %s1721_s2, 9216, %s25_s28, [#allocation3], %s1521_s30, %s1521_s30, %s1522_s9  }
   0xd   :  { %1516 = dma.done.wait [#allocation3], 9216  }
   0xe   :  { %1517 = vsyncadd [#allocation3], 4294958080  ;;  %v1523_v0 = vmov 0   ;;  %v1354_v1 = vld [vmem:[#allocation2 + $0xac] ss:$12 sps:$4 sm:$0xff]   ;;  %v47_v19 = vlaneseq  ;;  %v1525_v59 = vmov 0.0  }
   0xf   :  { %671 = vmatprep.mubr.bf16.mxu1 %v1523_v0  ;;  %v1356_v2 = vld [vmem:[#allocation2 + $0xa8] ss:$12 sps:$4 sm:$0xff]   ;;  %598 = vmatprep.subr.bf16.mxu0 %v1354_v1  ;;  %v1359_v4 = vld [vmem:[#allocation2 + $0x90] ss:$12 sps:$4 sm:$0xff]   ;;  %v1362_v6 = vld [vmem:[#allocation2 + $0x78] ss:$12 sps:$4 sm:$0xff]  }
  0x10   :  { %v1357_v3 = vld [vmem:[#allocation2 + $0x94] ss:$12 sps:$4 sm:$0xff]   ;;  %599 = vmatpush1.bf16.msra.mxu0 %v1356_v2  ;;  %v1360_v5 = vld [vmem:[#allocation2 + $0x7c] ss:$12 sps:$4 sm:$0xff]   ;;  %v1363_v7 = vld [vmem:[#allocation2 + $0x64] ss:$12 sps:$4 sm:$0xff]  }
  0x11   :  { %600 = vmatprep.subr.bf16.mxu0 %v1357_v3  ;;  %v1371_v8 = vld [vmem:[#allocation2 + $0x22c] ss:$12 sps:$4 sm:$0xff]   ;;  %v1374_v9 = vld [vmem:[#allocation2 + $0x228] ss:$12 sps:$4 sm:$0xff]   ;;  %v1380_v12 = vld [vmem:[#allocation2 + $0x210] ss:$12 sps:$4 sm:$0xff]  }
  0x12   :  { %639 = vmatprep.subr.bf16.mxu1 %v1371_v8  ;;  %v1365_v10 = vld [vmem:[#allocation2 + $0x60] ss:$12 sps:$4 sm:$0xff]   ;;  %v1383_v14 = vld [vmem:[#allocation2 + $0x1fc] ss:$12 sps:$4 sm:$0xff]   ;;  %v1386_v16 = vld [vmem:[#allocation2 + $0x1f8] ss:$12 sps:$4 sm:$0xff]  }
  0x13   :  { %640 = vmatpush1.bf16.msra.mxu1 %v1374_v9  ;;  %v1377_v11 = vld [vmem:[#allocation2 + $0x214] ss:$12 sps:$4 sm:$0xff]   ;;  %v1366_v13 = vld [vmem:[#allocation2 + $0x4c] ss:$12 sps:$4 sm:$0xff]   ;;  %v1389_v18 = vld [vmem:[#allocation2 + $0x1e4] ss:$12 sps:$4 sm:$0xff]  }
  0x14   :  { %601 = vmatpush1.bf16.msra.mxu0 %v1359_v4  ;;  %641 = vmatprep.subr.bf16.mxu1 %v1377_v11  ;;  %v1368_v15 = vld [vmem:[#allocation2 + $0x48] ss:$12 sps:$4 sm:$0xff]   ;;  %v1373_v20 = vld [vmem:[#allocation2 + $0x30] ss:$12 sps:$4 sm:$0xff]   ;;  %v1392_v22 = vld [vmem:[#allocation2 + $0x1e0] ss:$12 sps:$4 sm:$0xff]  }
  0x15   :  { %602 = vmatprep.subr.bf16.mxu0 %v1360_v5  ;;  %v1369_v17 = vld [vmem:[#allocation2 + $0x34] ss:$12 sps:$4 sm:$0xff]   ;;  %v1375_v21 = vld [vmem:[#allocation2 + $0x1c] ss:$12 sps:$4 sm:$0xff]   ;;  %v1395_v23 = vld [vmem:[#allocation2 + $0x1cc] ss:$12 sps:$4 sm:$0xff]  }
  0x16   :  { %v1524_v24 = vmov 1983009808   ;;  %v1379_v26 = vld [vmem:[#allocation2 + $0x18] ss:$12 sps:$4 sm:$0xff]   ;;  %v1576_v27 = vshrl.u32 %v47_v19, 7  ;;  %vm1526_vm1 = vmmov 0  }
  0x17   :  { %642 = vmatpush1.bf16.msra.mxu1 %v1380_v12  ;;  %v61_v25 = vunpack.c.l.s4 %v1524_v24  ;;  %v1398_v28 = vld [vmem:[#allocation2 + $0x1c8] ss:$12 sps:$4 sm:$0xff]   ;;  %v1381_v29 = vld [vmem:[#allocation2 + $0x4] ss:$12 sps:$4 sm:$0xff]   ;;  %v1385_v35 = vld [vmem:[#allocation2] ss:$12 sps:$4 sm:$0xff]  }
  0x18   :  { %603 = vmatpush1.bf16.msra.mxu0 %v1362_v6  ;;  %643 = vmatprep.subr.bf16.mxu1 %v1383_v14  ;;  %v1401_v30 = vld [vmem:[#allocation2 + $0x1b4] ss:$12 sps:$4 sm:$0xff]   ;;  %v49_v32 = vsub.s32 0, %v1576_v27  ;;  %v53_v33 = vsub.s32 1, %v1576_v27  ;;  %v57_v34 = vsub.s32 2, %v1576_v27  ;;  %vm1070_vm2 = vcmask 261120  }
  0x19   :  { %604 = vmatprep.subr.bf16.mxu0 %v1363_v7  ;;  %v62_v31 = vunpack.c.0.s8 %v61_v25  ;;  %v1387_v36 = vld [vmem:[#allocation2 + $0x16c] ss:$12 sps:$4 sm:$0xff]   ;;  %v1404_v37 = vld [vmem:[#allocation2 + $0x1b0] ss:$12 sps:$4 sm:$0xff]   ;;  %v1391_v40 = vld [vmem:[#allocation2 + $0x168] ss:$12 sps:$4 sm:$0xff]  }
  0x1a   :  { %v1407_v38 = vld [vmem:[#allocation2 + $0x19c] ss:$12 sps:$4 sm:$0xff]   ;;  %v1393_v41 = vld [vmem:[#allocation2 + $0x154] ss:$12 sps:$4 sm:$0xff]   ;;  %v1410_v43 = vld [vmem:[#allocation2 + $0x198] ss:$12 sps:$4 sm:$0xff]  }
  0x1b   :  { %644 = vmatpush1.bf16.msra.mxu1 %v1386_v16  ;;  %v65_v39 = vsub.s32 %v62_v31, %v1576_v27  ;;  %v46_v42 = vld [vmem:[%s1720_s1] sm:$0x7]  ;;  %v1413_v47 = vld [vmem:[#allocation2 + $0x184] ss:$12 sps:$4 sm:$0xff]   ;;  %v1399_v51 = vld [vmem:[#allocation2 + $0x13c] ss:$12 sps:$4 sm:$0xff]  }
  0x1c   :  { %605 = vmatpush1.bf16.msra.mxu0 %v1365_v10  ;;  %645 = vmatprep.subr.bf16.mxu1 %v1389_v18  ;;  %v50_v44 = vrot.slane %v46_v42, %v49_v32  ;;  %v54_v45 = vrot.slane %v46_v42, %v53_v33  ;;  %v58_v46 = vrot.slane %v46_v42, %v57_v34  ;;  %v1397_v48 = vld [vmem:[#allocation2 + $0x150] ss:$12 sps:$4 sm:$0xff]   ;;  %v1416_v52 = vld [vmem:[#allocation2 + $0x180] ss:$12 sps:$4 sm:$0xff]   ;;  %v1403_v57 = vld [vmem:[#allocation2 + $0x138] ss:$12 sps:$4 sm:$0xff]  }
  0x1d   :  { %606 = vmatprep.subr.bf16.mxu0 %v1366_v13  ;;  %v1419_v53 = vld [vmem:[#allocation2 + $0x170] ss:$12 sps:$4 sm:$0xff]   ;;  %v45_v55 = vld [vmem:[%s1719_s0] sm:$0x3f]  ;;  %v1411_v0 = vld [vmem:[#allocation2 + $0x10c] ss:$12 sps:$4 sm:$0xff]  }
  0x1e   :  { %v59_v49 = vcombine.low %v50_v44, %v54_v45  ;;  %v73_v50 = vrot.slane %v58_v46, %v65_v39  ;;  %v1405_v58 = vld [vmem:[#allocation2 + $0x124] ss:$12 sps:$4 sm:$0xff]   ;;  %v1409_v63 = vld [vmem:[#allocation2 + $0x120] ss:$12 sps:$4 sm:$0xff]   ;;  %v1415_v7 = vld [vmem:[#allocation2 + $0x108] ss:$12 sps:$4 sm:$0xff]  }
  0x1f   :  { %646 = vmatpush1.bf16.msra.mxu1 %v1392_v22  ;;  %v1421_v3 = vld [vmem:[#allocation2 + $0xb0] ss:$12 sps:$4 sm:$0xff]   ;;  %v1424_v5 = vld [vmem:[#allocation2 + $0x158] ss:$12 sps:$4 sm:$0xff]   ;;  %v1417_v8 = vld [vmem:[#allocation2 + $0xf4] ss:$12 sps:$4 sm:$0xff]  }
  0x20   :  { %607 = vmatpush1.bf16.msra.mxu0 %v1368_v15  ;;  %647 = vmatprep.subr.bf16.mxu1 %v1395_v23  ;;  %v66_v54 = vrot.slane %v59_v49, %v65_v39  ;;  %v1426_v9 = vld [vmem:[#allocation2 + $0x98] ss:$12 sps:$4 sm:$0xff]   ;;  %v1429_v10 = vld [vmem:[#allocation2 + $0x140] ss:$12 sps:$4 sm:$0xff]   ;;  %v1420_v11 = vld [vmem:[#allocation2 + $0xf0] ss:$12 sps:$4 sm:$0xff]  }
  0x21   :  { %608 = vmatprep.subr.bf16.mxu0 %v1369_v17  ;;  %v1422_v12 = vld [vmem:[#allocation2 + $0xdc] ss:$12 sps:$4 sm:$0xff]   ;;  %v1431_v13 = vld [vmem:[#allocation2 + $0x80] ss:$12 sps:$4 sm:$0xff]   ;;  %v1425_v14 = vld [vmem:[#allocation2 + $0xd8] ss:$12 sps:$4 sm:$0xff]  }
  0x22   :  { %v74_v56 = vcombine.low %v66_v54, %v73_v50  ;;  %v1432_v15 = vld [vmem:[#allocation2 + $0x128] ss:$12 sps:$4 sm:$0xff]   ;;  %v1427_v16 = vld [vmem:[#allocation2 + $0xc4] ss:$12 sps:$4 sm:$0xff]   ;;  %v1430_v19 = vld [vmem:[#allocation2 + $0xc0] ss:$12 sps:$4 sm:$0xff]  }
  0x23   :  { %648 = vmatpush1.bf16.msra.mxu1 %v1398_v28  ;;  %v1433_v17 = vld [vmem:[#allocation2 + $0x68] ss:$12 sps:$4 sm:$0xff]   ;;  %v1435_v18 = vld [vmem:[#allocation2 + $0x110] ss:$12 sps:$4 sm:$0xff]   ;;  %v1438_v22 = vld [vmem:[#allocation2 + $0xf8] ss:$12 sps:$4 sm:$0xff]  }
  0x24   :  { %609 = vmatpush1.bf16.msra.mxu0 %v1373_v20  ;;  %649 = vmatprep.subr.bf16.mxu1 %v1401_v30  ;;  %vm75_vm0 = vcmp.eq.s32.totalorder %v45_v55, %v74_v56  ;;  %v1436_v20 = vld [vmem:[#allocation2 + $0x50] ss:$12 sps:$4 sm:$0xff]   ;;  %v1439_v24 = vld [vmem:[#allocation2 + $0x38] ss:$12 sps:$4 sm:$0xff]   ;;  %v1441_v25 = vld [vmem:[#allocation2 + $0xe0] ss:$12 sps:$4 sm:$0xff]  }
  0x25   :  { %610 = vmatprep.subr.bf16.mxu0 %v1375_v21  ;;  %v1131_v60 = vsel %vm75_vm0, 1.0, %v1525_v59  ;;  %v1434_v21 = vld [vmem:[#allocation2 + $0x230] ss:$12 sps:$4 sm:$0xff]   ;;  %v1442_v28 = vld [vmem:[#allocation2 + $0x20] ss:$12 sps:$4 sm:$0xff]   ;;  %s1527_s18 = smov [#allocation5]  }
  0x26   :  { %v79_v61 = vcombine.high %v1131_v60, %v1131_v60  ;;  %v86_v62 = vrot.slane %v1131_v60, %v65_v39  ;;  %v1440_v30 = vld [vmem:[#allocation2 + $0x200] ss:$12 sps:$4 sm:$0xff]   ;;  %v1445_v31 = vld [vmem:[#allocation2 + $0x8] ss:$12 sps:$4 sm:$0xff]   ;;  %v1447_v42 = vld [vmem:[#allocation2 + $0x1b8] ss:$12 sps:$4 sm:$0xff]  }
  0x27   :  { %650 = vmatpush1.bf16.msra.mxu1 %v1404_v37  ;;  %v1451_v37 = vld [vmem:[%s1723_s4 + $0x38] sm:$0xff]   ;;  %v1449_v44 = vld [vmem:[#allocation2 + $0x188] ss:$12 sps:$4 sm:$0xff]   ;;  %v1456_v46 = vld [vmem:[%s1723_s4 + $0x60] sm:$0xff]   ;;  %s1122_s19 = sshll.u32 %s1527_s18, 4  ;;  %vm1114_vm3 = vcmask 17408   ;;  %s1123_s19 = int_to_ptr.vmem [resolvable:$true] %s1122_s19 }
  0x28   :  { %611 = vmatpush1.bf16.msra.mxu0 %v1379_v26  ;;  %651 = vmatprep.subr.bf16.mxu1 %v1407_v38  ;;  %v93_v1 = vrot.slane %v79_v61, %v65_v39  ;;  %v94_v2 = vcombine.high %v86_v62, %v86_v62  ;;  %v98_v23 = vpack.c.bf16 %v86_v62, %v86_v62  ;;  %v1437_v26 = vld [vmem:[#allocation2 + $0x218] ss:$12 sps:$4 sm:$0xff]   ;;  %v1452_v38 = vld [vmem:[%s1723_s4 + $0x70] sm:$0xff]   ;;  %v1455_v45 = vld [vmem:[%s1723_s4 + $0x28] sm:$0xff]   ;;  %p1501_p6 = scmp.lt.s32.totalorder %s1123_s19, %s1123_s19 }
  0x29   :  { %612 = vmatprep.subr.bf16.mxu0 %v1381_v29  ;;  %v1444_v29 = vld [vmem:[#allocation2 + $0xc8] ss:$12 sps:$4 sm:$0xff]   ;;  %v1446_v39 = vld [vmem:[#allocation2 + $0x1d0] ss:$12 sps:$4 sm:$0xff]   ;;  %v1464_v54 = vld [vmem:[%s1723_s4 + $0x40] sm:$0xff]  }
  0x2a   :  { %v1595_v4 = vpack.c.bf16 %v93_v1, %v93_v1  ;;  %v99_v6 = vpack.c.bf16 %v94_v2, %v94_v2  ;;  %v1459_v49 = vld [vmem:[%s1723_s4 + $0x18] sm:$0xff]   ;;  %v1460_v50 = vld [vmem:[%s1723_s4 + $0x50] sm:$0xff]   ;;  %v1466_v56 = vld [vmem:[%s1723_s4] sm:$0xff]  }
  0x2b   :  { %652 = vmatpush1.bf16.msra.mxu1 %v1410_v43  ;;  %v1448_v43 = vld [vmem:[#allocation2 + $0x1a0] ss:$12 sps:$4 sm:$0xff]   ;;  %v1465_v55 = vld [vmem:[%s1723_s4 + $0xb8] sm:$0xff]   ;;  %v1471_v62 = vld [vmem:[%s1723_s4 + $0x90] sm:$0xff]  }
  0x2c   :  { %613 = vmatpush1.bf16.msra.mxu0 %v1385_v35  ;;  %653 = vmatprep.subr.bf16.mxu1 %v1413_v47  ;;  %v1450_v35 = vld [vmem:[%s1723_s4 + $0x78] sm:$0xff]   ;;  %v1457_v47 = vld [vmem:[%s1723_s4 + $0x20] sm:$0xff]  }
  0x2d   :  { %614 = vmatprep.subr.bf16.mxu0 %v1387_v36  ;;  %630 = vmatprep.mubr.bf16.mxu0 %v99_v6  ;;  %v1443_v36 = vld [vmem:[#allocation2 + $0x1e8] ss:$12 sps:$4 sm:$0xff]   ;;  %v1469_v60 = vld [vmem:[%s1723_s4 + $0xa0] sm:$0xff]   ;;  %v1470_v61 = vld [vmem:[%s1723_s4 + $0x98] sm:$0xff]  }
  0x2e   :  { %v1475_v27 = vld [vmem:[%s1725_s6] sm:$0xff]  }
  0x2f   :  { %654 = vmatpush1.bf16.msra.mxu1 %v1416_v52  ;;  %v1462_v52 = vld [vmem:[%s1723_s4 + $0x48] sm:$0xff]  }
  0x30   :  { %615 = vmatpush2.bf16.msra.mxu0 %v1391_v40  ;;  %1233 = vmatprep.subr.bf16.mxu1 %v1419_v53  ;;  %v1453_v40 = vld [vmem:[%s1723_s4 + $0x30] sm:$0xff]   ;;  %v1463_v53 = vld [vmem:[%s1723_s4 + $0x8] sm:$0xff]  }
  0x31   :  { %616 = vmatprep.subr.bf16.mxu0 %v1393_v41  ;;  %v1454_v41 = vld [vmem:[%s1723_s4 + $0x68] sm:$0xff]  }
  0x32   :  { %672 = vmatmul.mubr.bf16.vlgmr.msra.gmra.mxu1 %v1595_v4 }
  0x33   :  { %1234 = vmatpush3.bf16.msra.mxu1 %v1421_v3  ;;  %712 = vmatprep.mubr.bf16.mxu1 %v99_v6 }
  0x34   :  { %617 = vmatpush2.bf16.msra.mxu0 %v1397_v48  ;;  %1235 = vmatprep.subr.bf16.mxu1 %v1424_v5  ;;  %v1458_v48 = vld [vmem:[%s1723_s4 + $0x58] sm:$0xff]   ;;  %v197_v5 = vld [vmem:[%s1722_s3] sm:$0x7] }
  0x35   :  { %618 = vmatprep.subr.bf16.mxu0 %v1399_v51  ;;  %v1461_v51 = vld [vmem:[%s1723_s4 + $0x10] sm:$0xff]   ;;  %v202_v6 = vrot.slane %v197_v5, %v49_v32 }
  0x37   :  { %1236 = vmatpush3.bf16.msra.mxu1 %v1426_v9 }
  0x38   :  { %619 = vmatpush2.bf16.msra.mxu0 %v1403_v57  ;;  %1237 = vmatprep.subr.bf16.mxu1 %v1429_v10  ;;  %v1467_v57 = vld [vmem:[%s1723_s4 + $0xb0] sm:$0xff]  }
  0x39   :  { %620 = vmatprep.subr.bf16.mxu0 %v1405_v58  ;;  %v1468_v58 = vld [vmem:[%s1723_s4 + $0xa8] sm:$0xff]  }
  0x3b   :  { %1238 = vmatpush3.bf16.msra.mxu1 %v1431_v13 }
  0x3c   :  { %621 = vmatpush2.bf16.msra.mxu0 %v1409_v63  ;;  %1239 = vmatprep.subr.bf16.mxu1 %v1432_v15  ;;  %v1472_v63 = vld [vmem:[%s1723_s4 + $0x88] sm:$0xff]  }
  0x3d   :  { %622 = vmatprep.subr.bf16.mxu0 %v1411_v0  ;;  %v1473_v0 = vld [vmem:[%s1723_s4 + $0x80] sm:$0xff]  }
  0x3f   :  { %1240 = vmatpush3.bf16.msra.mxu1 %v1433_v17 }
  0x40   :  { %623 = vmatpush2.bf16.msra.mxu0 %v1415_v7  ;;  %1241 = vmatprep.subr.bf16.mxu1 %v1435_v18  ;;  %v206_v7 = vrot.slane %v197_v5, %v53_v33 }
  0x41   :  { %624 = vmatprep.subr.bf16.mxu0 %v1417_v8 }
  0x43   :  { %1242 = vmatpush3.bf16.msra.mxu1 %v1436_v20 }
  0x44   :  { %625 = vmatpush2.bf16.msra.mxu0 %v1420_v11  ;;  %1243 = vmatprep.subr.bf16.mxu1 %v1438_v22 }
  0x45   :  { %626 = vmatprep.subr.bf16.mxu0 %v1422_v12 }
  0x47   :  { %1244 = vmatpush3.bf16.msra.mxu1 %v1439_v24 }
  0x48   :  { %627 = vmatpush2.bf16.msra.mxu0 %v1425_v14  ;;  %1245 = vmatprep.subr.bf16.mxu1 %v1441_v25 }
  0x49   :  { %628 = vmatprep.subr.bf16.mxu0 %v1427_v16 }
  0x4b   :  { %1246 = vmatpush3.bf16.msra.mxu1 %v1442_v28 }
  0x4c   :  { %629 = vmatpush2.bf16.msra.mxu0 %v1430_v19  ;;  %1247 = vmatprep.subr.bf16.mxu1 %v1444_v29 }
  0x4d   :  { %1298 = vmatprep.subr.bf16.mxu0 %v1525_v59 }
  0x4f   :  { %631 = vmatmul.mubr.bf16.vlgmr.msra.gmra.mxu0 %v98_v23  ;;  %1248 = vmatpush3.bf16.msra.mxu1 %v1445_v31 }
  0x50   :  { %1299 = vmatpush3.bf16.msra.mxu0 %v1434_v21  ;;  %1314 = vmatprep.mubr.msk.bf16.mxu0 %vm1526_vm1, %v1525_v59 }
  0x51   :  { %1300 = vmatprep.subr.bf16.mxu0 %v1525_v59  ;;  %1264 = vmatprep.subr.bf16.mxu1 %v1450_v35 }
  0x52   :  { %713 = vmatmul.mubr.bf16.vlgmr.msra.gmra.mxu1 %v98_v23  ;;  %v210_v23 = vrot.slane %v197_v5, %v57_v34 }
  0x53   :  { %1265 = vmatpush3.bf16.msra.mxu1 %v1451_v37 }
  0x54   :  { %1301 = vmatpush3.bf16.msra.mxu0 %v1437_v26  ;;  %1266 = vmatprep.subr.bf16.mxu1 %v1452_v38 }
  0x55   :  { %1302 = vmatprep.subr.bf16.mxu0 %v1525_v59 }
  0x57   :  { %1267 = vmatpush3.bf16.msra.mxu1 %v1453_v40 }
  0x58   :  { %1303 = vmatpush3.bf16.msra.mxu0 %v1440_v30  ;;  %1268 = vmatprep.subr.bf16.mxu1 %v1454_v41  ;;  %v1204_v41 = vld [vmem:[%s1724_s5] ss:$0 sm:$0xff]  ;;  %s1496_s5 = scalar_lea.vmem %s1123_s19, 32 }
  0x59   :  { %1304 = vmatprep.subr.bf16.mxu0 %v1525_v59  ;;  %p1497_p5 = scmp.ne.s32.totalorder %s1123_s19, %s1496_s5  ;;  %p1502_p7 = scmp.lt.s32.totalorder %s1496_s5, %s1496_s5 }
  0x5b   :  { %1269 = vmatpush3.bf16.msra.mxu1 %v1455_v45  ;;  %p1503_p8 = por %p1502_p7, %p1501_p6 }
  0x5c   :  { %1305 = vmatpush3.bf16.msra.mxu0 %v1443_v36  ;;  %1270 = vmatprep.subr.bf16.mxu1 %v1456_v46  ;;  %v1474_v36 = vld [vmem:[%s1725_s6 + $0x8] sm:$0xff]  }
  0x5d   :  { %1306 = vmatprep.subr.bf16.mxu0 %v1525_v59  ;;  %p1504_p9 = pnand %p1503_p8, %p1497_p5 }
  0x5f   :  { %1271 = vmatpush3.bf16.msra.mxu1 %v1457_v47 }
  0x60   :  { %1307 = vmatpush3.bf16.msra.mxu0 %v1446_v39  ;;  %1272 = vmatprep.subr.bf16.mxu1 %v1458_v48 }
  0x61   :  { %1308 = vmatprep.subr.bf16.mxu0 %v1525_v59 }
  0x63   :  { %1273 = vmatpush3.bf16.msra.mxu1 %v1459_v49  ;;  %v1229_v49 = vld [vmem:[%s1726_s7] ss:$0 sm:$0xff] }
  0x64   :  { %1309 = vmatpush3.bf16.msra.mxu0 %v1447_v42  ;;  %1274 = vmatprep.subr.bf16.mxu1 %v1460_v50 }
  0x65   :  { %1310 = vmatprep.subr.bf16.mxu0 %v1525_v59 }
  0x67   :  { %1275 = vmatpush3.bf16.msra.mxu1 %v1461_v51 }
  0x68   :  { %1311 = vmatpush3.bf16.msra.mxu0 %v1448_v43  ;;  %1276 = vmatprep.subr.bf16.mxu1 %v1462_v52 }
  0x69   :  { %1312 = vmatprep.subr.bf16.mxu0 %v1525_v59 }
  0x6b   :  { %1277 = vmatpush3.bf16.msra.mxu1 %v1463_v53 }
  0x6c   :  { %1313 = vmatpush3.bf16.msra.mxu0 %v1449_v44  ;;  %1278 = vmatprep.subr.bf16.mxu1 %v1464_v54 }
  0x6d   :  { %1318 = vmatprep.subr.bf16.mxu0 %v1525_v59 }
  0x6f   :  { %1315 = vmatmul.mubr.bf16.vlgmr.msra.gmra.mxu0 %v1595_v4  ;;  %1279 = vmatpush3.bf16.msra.mxu1 %v1466_v56 }
  0x70   :  { %1334 = vmatprep.mubr.msk.bf16.mxu0 %vm1526_vm1, %v1525_v59  ;;  %1319 = vmatpush3.bf16.msra.mxu0 %v1465_v55 }
  0x71   :  { %1320 = vmatprep.subr.bf16.mxu0 %v1525_v59  ;;  %1338 = vmatprep.subr.bf16.mxu1 %v1525_v59 }
  0x74   :  { %1321 = vmatpush3.bf16.msra.mxu0 %v1467_v57 }
  0x75   :  { %1322 = vmatprep.subr.bf16.mxu0 %v1525_v59 }
  0x78   :  { %1323 = vmatpush3.bf16.msra.mxu0 %v1468_v58 }
  0x79   :  { %1324 = vmatprep.subr.bf16.mxu0 %v1525_v59 }
  0x7c   :  { %1325 = vmatpush3.bf16.msra.mxu0 %v1469_v60 }
  0x7d   :  { %1326 = vmatprep.subr.bf16.mxu0 %v1525_v59 }
  0x80   :  { %1327 = vmatpush3.bf16.msra.mxu0 %v1470_v61 }
  0x81   :  { %1328 = vmatprep.subr.bf16.mxu0 %v1525_v59 }
  0x84   :  { %1329 = vmatpush3.bf16.msra.mxu0 %v1471_v62 }
  0x85   :  { %1330 = vmatprep.subr.bf16.mxu0 %v1525_v59 }
  0x88   :  { %1331 = vmatpush3.bf16.msra.mxu0 %v1472_v63 }
  0x89   :  { %1332 = vmatprep.subr.bf16.mxu0 %v1525_v59 }
  0x8c   :  { %1333 = vmatpush3.bf16.msra.mxu0 %v1473_v0 }
  0xf2   :  { %v673_v1 = vpop.f32.mrf.mxu1 }
  0xf4   :  { %v675_v2 = vpop.f32.mrf.mxu1 }
  0xf6   :  { %v677_v3 = vpop.f32.mrf.mxu1 }
  0xf8   :  { %v678_v4 = vpop.f32.mrf.mxu1 }
 0x10f   :  { %v632_v8 = vpop.f32.mrf.mxu0 }
 0x110   :  { %v633_v9 = vadd.f32 %v632_v8, %v202_v6 }
 0x111   :  { %v634_v10 = vpop.f32.mrf.mxu0 }
 0x112   :  { %v674_v11 = vadd.f32 %v673_v1, %v633_v9  ;;  %v635_v12 = vadd.f32 %v634_v10, %v206_v7  ;;  %v1249_v20 = vpop.f32.mrf.mxu1 }
 0x113   :  { %v636_v13 = vpop.f32.mrf.mxu0 }
 0x114   :  { %v676_v14 = vadd.f32 %v675_v2, %v635_v12  ;;  %v760_v15 = vmax.f32 %v674_v11, 0.0  ;;  %v1250_v32 = vpop.f32.mrf.mxu1 }
 0x115   :  { %v637_v16 = vpop.f32.mrf.mxu0  ;;  %v1251_v22 = vadd.f32 %v1250_v32, %v1249_v20 }
 0x116   :  { %v761_v17 = vmax.f32 %v676_v14, 0.0  ;;  %v763_v19 = vpack.c.bf16 %v760_v15, %v760_v15  ;;  %v1252_v33 = vpop.f32.mrf.mxu1 }
 0x117   :  { %v715_v24 = vadd.f32 %v1251_v22, %v210_v23 }
 0x118   :  { %v764_v18 = vpack.c.bf16 %v761_v17, %v761_v17  ;;  %v1253_v21 = vpop.f32.mrf.mxu1 }
 0x11a   :  { %997 = vmatprep.mubr.bf16.mxu1 %v764_v18 }
 0x11b   :  { %998 = vmatmul.mubr.bf16.vlgmr.msra.gmra.mxu1 %v763_v19 }
 0x11c   :  { %1342 = vmatprep.mubr.msk.bf16.mxu1 %vm1526_vm1, %v1525_v59  ;;  %1339 = vmatpush3.bf16.msra.mxu1 %v1474_v36 }
 0x11d   :  { %1340 = vmatprep.subr.bf16.mxu1 %v1525_v59 }
 0x120   :  { %1341 = vmatpush3.bf16.msra.mxu1 %v1475_v27 }
 0x12f   :  { %v754_v25 = vpop.f32.mrf.mxu0 }
 0x130   :  { %v755_v26 = vadd.f32 %v754_v25, %v715_v24 }
 0x131   :  { %v1316_v28 = vpop.f32.mrf.mxu0 }
 0x132   :  { %v762_v29 = vmax.f32 %v755_v26, 0.0 }
 0x133   :  { %v757_v30 = vpop.f32.mrf.mxu0 }
 0x134   :  { %v765_v31 = vpack.c.bf16 %v762_v29, %v762_v29 }
 0x135   :  { %v1317_v35 = vpop.f32.mrf.mxu0 }
 0x136   :  { %1335 = vmatmul.mubr.bf16.vlgmr.msra.gmra.mxu0 %v765_v31 }
 0x1db   :  { %v1280_v34 = vpop.f32.mrf.mxu1 }
 0x1dd   :  { %v1281_v37 = vpop.f32.mrf.mxu1 }
 0x1de   :  { %v1282_v40 = vadd.f32 %v1281_v37, %v1280_v34 }
 0x1df   :  { %v1283_v38 = vpop.f32.mrf.mxu1 }
 0x1e0   :  { %v1000_v42 = vadd.f32 %v1282_v40, %v1204_v41 }
 0x1e1   :  { %v1284_v39 = vpop.f32.mrf.mxu1 }
 0x1f6   :  { %v1039_v43 = vpop.f32.mrf.mxu0 }
 0x1f7   :  { %v1040_v44 = vadd.f32 %v1039_v43, %v1000_v42 }
 0x1f8   :  { %v1336_v45 = vpop.f32.mrf.mxu0 }
 0x1f9   :  { %v1045_v46 = vmax.f32 %v1040_v44, 0.0 }
 0x1fa   :  { %v1042_v59 = vpop.f32.mrf.mxu0 }
 0x1fb   :  { %v1046_v47 = vpack.c.bf16 %v1045_v46, %v1045_v46 }
 0x1fc   :  { %v1337_v48 = vpop.f32.mrf.mxu0 }
 0x1fd   :  { %1343 = vmatmul.mubr.msk.bf16.vlgmr.msra.gmra.mxu1 %vm1070_vm2, %v1046_v47 }
 0x2bd   :  { %v1108_v50 = vpop.f32.mrf.mxu1 }
 0x2be   :  { %v1109_v51 = vadd.f32 %v1229_v49, %v1108_v50 }
 0x2bf   :  { %v1344_v52 = vpop.f32.mrf.mxu1 }
 0x2c0   :  { %1115 = vst.msk [vmem:[#allocation5] sm:$0x3] %vm1114_vm3, %v1109_v51 }
 0x2c1   :  { %v1111_v53 = vpop.f32.mrf.mxu1 }
 0x2c2   :  { %1507 = shalt.err (!%p1504_p9)
}
 0x2c3   :  { %1125 = dma.vmem_to_hbm [thread:$0]  %s1123_s19, 32, %s1727_s8, [#allocation4]   ;;  %v1345_v54 = vpop.f32.mrf.mxu1 }
 0x2c4   :  { %1518 = dma.done.wait [#allocation4], 32  }
 0x2c5   :  { %1519 = vsyncadd [#allocation4], 4294967264 }
 0x2c6   :  { %1129 = vsyncpa [#allocation3], 1 }
 0x2c7   :  { %1130 = vsyncpa [#allocation4], 1 }

</bundles_post_ra>
